<compile_context>
chip_gen: v6e
topology: v6e:2x2x1
jax: 0.10.0
libtpu: 0.0.40
codegen_flags: <defaults>
</compile_context>

<pallas_src>
import math
import functools

import jax
import jax.numpy as jnp
from jax import lax
from jax.experimental import pallas as pl
from jax.experimental.pallas import tpu as pltpu

M_MARGIN = 4
PI_APPROX = 3.14159265  # same constant the PyTorch module uses


def _round_up(v, m):
    return ((v + m - 1) // m) * m


def _sphere_product_kernel(x_ref, wt_ref, nrm_ref, lbl_ref, o_ref, *,
                           inv_one_plus_lamb, tile_c):
    x = x_ref[...]                     # (TB, D)  f32, unnormalized input rows
    wt = wt_ref[...]                   # (D, TC)  f32, pre-L2-normalized classes
    norm_x = nrm_ref[...]              # (TB, 1)  f32, ||x|| per row
    label = lbl_ref[...]               # (TB, 1)  int32 (padded rows = -1)

    # s = x @ wn^T = ||x|| * cos_theta  (x-normalization folded out algebraically)
    s = jnp.dot(x, wt, preferred_element_type=jnp.float32)        # (TB, TC)

    # clamp(cos_theta, -1, 1) * ||x||  ==  clamp(s, -||x||, +||x||)
    s = jnp.minimum(jnp.maximum(s, -norm_x), norm_x)

    # Global column ids for this class tile (one-hot must use GLOBAL index).
    col = (lax.broadcasted_iota(jnp.int32, s.shape, 1)
           + pl.program_id(1) * tile_c)                           # (TB, TC)
    mask = (col == label)                                         # (TB, TC) bool

    # --- margin math only on the target column -------------------------------
    s_lab = jnp.sum(jnp.where(mask, s, 0.0), axis=1, keepdims=True)   # (TB, 1)
    cos_lab = s_lab / jnp.maximum(norm_x, 1e-12)                       # in [-1, 1]

    # cos(4*theta) via Chebyshev: 8c^4 - 8c^2 + 1
    c2 = cos_lab * cos_lab
    cos_m = 8.0 * c2 * c2 - 8.0 * c2 + 1.0

    # k = floor(m * acos(c) / pi) via cosine thresholds; sign = (-1)^k accumulated
    # multiplicatively (no float mod).  All on a (TB, 1) column -> negligible cost.
    k = jnp.zeros_like(cos_lab)
    sign = jnp.ones_like(cos_lab)
    for j in range(1, M_MARGIN + 1):
        boundary = jnp.float32(math.cos(j * PI_APPROX / M_MARGIN))
        hit = cos_lab <= boundary
        k = k + hit.astype(jnp.float32)
        sign = jnp.where(hit, -sign, sign)
    phi = sign * cos_m - 2.0 * k                                       # (TB, 1)

    # out = s + one_hot * inv(1+lamb) * (||x||*phi - s_label)
    delta = (norm_x * phi - s_lab) * jnp.float32(inv_one_plus_lamb)    # (TB, 1)
    o_ref[...] = jnp.where(mask, s + delta, s).astype(o_ref.dtype)


def sphere_product(x, weight, label, *, iteration=1, base=1000.0, gamma=0.12,
                   power=1, lambda_min=5.0, tile_b=None, tile_c=None):
    """SphereProduct forward. x: (B, D) f32, weight: (C, D) f32, label: (B,) int."""
    B, D = x.shape
    C = weight.shape[0]
    lamb = max(lambda_min, base * (1.0 + gamma * iteration) ** (-power))
    inv_one_plus_lamb = 1.0 / (1.0 + lamb)

    # Tile sizes: lane-dense output (TC multiple of 128); defaults sized so the
    # double-buffered footprint stays far below v7x's 64 MiB VMEM.
    if tile_b is None:
        tile_b = _round_up(B, 8) if B <= 256 else 256
    if tile_c is None:
        tile_c = _round_up(C, 128) if C <= 512 else 512

    B_pad = _round_up(B, tile_b)
    C_pad = _round_up(C, tile_c)

    # --- plain-JAX prep (parameter / layout glue, done once) -----------------
    x_p = jnp.pad(x.astype(jnp.float32), ((0, B_pad - B), (0, 0)))
    w = weight.astype(jnp.float32)
    wn = w / jnp.maximum(jnp.linalg.norm(w, axis=1, keepdims=True), 1e-12)
    wn_t = jnp.pad(wn.T, ((0, 0), (0, C_pad - C)))                 # (D, C_pad)
    norm_x = jnp.linalg.norm(x_p, axis=1, keepdims=True)           # (B_pad, 1)
    label_p = jnp.pad(label.astype(jnp.int32).reshape(-1, 1),
                      ((0, B_pad - B), (0, 0)), constant_values=-1)

    grid = (B_pad // tile_b, C_pad // tile_c)

    # VMEM budget: double-buffered inputs + output tile, with margin.
    bytes_x = tile_b * D * 4
    bytes_w = D * tile_c * 4
    bytes_o = tile_b * tile_c * 4
    est = 3 * (bytes_x + bytes_w + bytes_o) + (1 << 20)
    vmem_limit = int(min(max(est, 8 << 20), 48 << 20))

    kernel = functools.partial(_sphere_product_kernel,
                               inv_one_plus_lamb=inv_one_plus_lamb,
                               tile_c=tile_c)

    out = pl.pallas_call(
        kernel,
        out_shape=jax.ShapeDtypeStruct((B_pad, C_pad), jnp.float32),
        grid=grid,
        in_specs=[
            pl.BlockSpec((tile_b, D), lambda i, j: (i, 0)),        # x (resident over j)
            pl.BlockSpec((D, tile_c), lambda i, j: (0, j)),        # wn^T (streamed)
            pl.BlockSpec((tile_b, 1), lambda i, j: (i, 0)),        # ||x||
            pl.BlockSpec((tile_b, 1), lambda i, j: (i, 0)),        # label
        ],
        out_specs=pl.BlockSpec((tile_b, tile_c), lambda i, j: (i, j)),
        compiler_params=pltpu.CompilerParams(
            dimension_semantics=("parallel", "parallel"),
            vmem_limit_bytes=vmem_limit,
        ),
    )(x_p, wn_t, norm_x, label_p)

    return out[:B, :C]


def _reference(x, weight, label, *, iteration=1):
    """Pure-JAX reference mirroring the PyTorch forward (uses real acos)."""
    lamb = max(5.0, 1000.0 * (1.0 + 0.12 * iteration) ** (-1))
    xn = x / jnp.maximum(jnp.linalg.norm(x, axis=1, keepdims=True), 1e-12)
    wn = weight / jnp.maximum(jnp.linalg.norm(weight, axis=1, keepdims=True), 1e-12)
    cos_theta = jnp.clip(xn @ wn.T, -1.0, 1.0)
    cos_m_theta = 8.0 * cos_theta ** 4 - 8.0 * cos_theta ** 2 + 1.0
    theta = jnp.arccos(cos_theta)
    k = jnp.floor(M_MARGIN * theta / PI_APPROX)
    phi_theta = (-1.0) ** k * cos_m_theta - 2.0 * k
    norm_feat = jnp.linalg.norm(x, axis=1, keepdims=True)
    one_hot = jax.nn.one_hot(label, weight.shape[0], dtype=jnp.float32)
    out = one_hot * (phi_theta - cos_theta) / (1.0 + lamb) + cos_theta
    return out * norm_feat


if __name__ == "__main__":
    key = jax.random.PRNGKey(0)

    # --- test 1: small shapes matching the module's intent --------------------
    in_features, out_features, batch = 32, 16, 8
    kx, kw, kl = jax.random.split(key, 3)
    x = jax.random.normal(kx, (batch, in_features), dtype=jnp.float32)
    bound = math.sqrt(6.0 / (in_features + out_features))   # xavier_uniform
    weight = jax.random.uniform(kw, (out_features, in_features),
                                minval=-bound, maxval=bound, dtype=jnp.float32)
    label = jax.random.randint(kl, (batch,), 0, out_features, dtype=jnp.int32)

    out = jax.block_until_ready(sphere_product(x, weight, label, iteration=1))
    ref = _reference(x, weight, label, iteration=1)
    assert out.shape == (batch, out_features)
    assert jnp.allclose(out, ref, rtol=1e-4, atol=1e-4), "mismatch vs reference (test 1)"

    # --- test 2: force a multi-tile grid (non-multiple C, padded, global one-hot) ---
    in_features, out_features, batch = 64, 300, 24
    kx, kw, kl = jax.random.split(jax.random.PRNGKey(1), 3)
    x2 = jax.random.normal(kx, (batch, in_features), dtype=jnp.float32)
    bound = math.sqrt(6.0 / (in_features + out_features))
    w2 = jax.random.uniform(kw, (out_features, in_features),
                            minval=-bound, maxval=bound, dtype=jnp.float32)
    l2 = jax.random.randint(kl, (batch,), 0, out_features, dtype=jnp.int32)

    out2 = jax.block_until_ready(
        sphere_product(x2, w2, l2, iteration=1, tile_b=8, tile_c=128))  # grid (3, 3)
    ref2 = _reference(x2, w2, l2, iteration=1)
    assert out2.shape == (batch, out_features)
    assert jnp.allclose(out2, ref2, rtol=1e-4, atol=1e-4), "mismatch vs reference (test 2)"

    print("KERNEL_OK")
</pallas_src>

<mosaic_0001>
module attributes {stable_mosaic.version = 11 : i64} {
  func.func @_sphere_product_kernel(%arg0: i32, %arg1: i32, %arg2: memref<8x32xf32, #tpu.memory_space<vmem>>, %arg3: memref<32x128xf32, #tpu.memory_space<vmem>>, %arg4: memref<8x1xf32, #tpu.memory_space<vmem>>, %arg5: memref<8x1xi32, #tpu.memory_space<vmem>>, %arg6: memref<8x128xf32, #tpu.memory_space<vmem>>) attributes {dimension_semantics = [#tpu.dimension_semantics<parallel>, #tpu.dimension_semantics<parallel>], iteration_bounds = array<i64: 1, 1>, scalar_prefetch = 0 : i64, scratch_operands = 0 : i64, tpu.core_type = #tpu.core_type<tc>, window_params = [{transform_indices = @transform_0, window_bounds = array<i64: 8, 32>}, {transform_indices = @transform_1, window_bounds = array<i64: 32, 128>}, {transform_indices = @transform_2, window_bounds = array<i64: 8, 1>}, {transform_indices = @transform_3, window_bounds = array<i64: 8, 1>}, {transform_indices = @transform_4, window_bounds = array<i64: 8, 128>}]} {
    %c0 = arith.constant 0 : index
    %c0_0 = arith.constant 0 : index
    %0 = vector.load %arg2[%c0, %c0_0] : memref<8x32xf32, #tpu.memory_space<vmem>>, vector<8x32xf32>
    %c0_1 = arith.constant 0 : index
    %c0_2 = arith.constant 0 : index
    %1 = vector.load %arg3[%c0_1, %c0_2] : memref<32x128xf32, #tpu.memory_space<vmem>>, vector<32x128xf32>
    %c0_3 = arith.constant 0 : index
    %c0_4 = arith.constant 0 : index
    %2 = vector.load %arg4[%c0_3, %c0_4] : memref<8x1xf32, #tpu.memory_space<vmem>>, vector<8x1xf32>
    %c0_5 = arith.constant 0 : index
    %c0_6 = arith.constant 0 : index
    %3 = vector.load %arg5[%c0_5, %c0_6] : memref<8x1xi32, #tpu.memory_space<vmem>>, vector<8x1xi32>
    %cst = arith.constant dense<0.000000e+00> : vector<8x128xf32>
    %4 = tpu.matmul %0, %1, %cst {dimension_numbers = #tpu.dot_dimension_numbers<[1], [0], [0], [1], [0, 0, 1, 1], [], []>} : vector<8x32xf32>, vector<32x128xf32>, vector<8x128xf32> -> vector<8x128xf32>
    %cst_7 = arith.constant 0.000000e+00 : f32
    %5 = vector.broadcast %cst_7 : f32 to vector<8x1xf32>
    %6 = arith.subf %5, %2 : vector<8x1xf32>
    %7 = vector.broadcast %6 : vector<8x1xf32> to vector<8x128xf32>
    %8 = arith.maximumf %4, %7 : vector<8x128xf32>
    %9 = vector.broadcast %2 : vector<8x1xf32> to vector<8x128xf32>
    %10 = arith.minimumf %8, %9 : vector<8x128xf32>
    %11 = tpu.iota {dimensions = array<i32: 1>} : vector<8x128xi32>
    %c128_i32 = arith.constant 128 : i32
    %12 = arith.muli %arg1, %c128_i32 : i32
    %13 = vector.broadcast %12 : i32 to vector<8x128xi32>
    %14 = arith.addi %11, %13 : vector<8x128xi32>
    %15 = vector.broadcast %3 : vector<8x1xi32> to vector<8x128xi32>
    %16 = arith.cmpi eq, %14, %15 : vector<8x128xi32>
    %cst_8 = arith.constant 0.000000e+00 : f32
    %17 = vector.broadcast %cst_8 : f32 to vector<8x128xf32>
    %18 = arith.select %16, %10, %17 : vector<8x128xi1>, vector<8x128xf32>
    %cst_9 = arith.constant dense<0.000000e+00> : vector<8xf32>
    %19 = vector.multi_reduction <add>, %18, %cst_9 [1] : vector<8x128xf32> to vector<8xf32>
    %20 = vector.shape_cast %19 : vector<8xf32> to vector<8x1xf32>
    %cst_10 = arith.constant 9.99999996E-13 : f32
    %21 = vector.broadcast %cst_10 : f32 to vector<8x1xf32>
    %22 = arith.maximumf %2, %21 : vector<8x1xf32>
    %23 = arith.divf %20, %22 : vector<8x1xf32>
    %24 = arith.mulf %23, %23 : vector<8x1xf32>
    %cst_11 = arith.constant 8.000000e+00 : f32
    %25 = vector.broadcast %cst_11 : f32 to vector<8x1xf32>
    %26 = arith.mulf %25, %24 : vector<8x1xf32>
    %27 = arith.mulf %26, %24 : vector<8x1xf32>
    %cst_12 = arith.constant 8.000000e+00 : f32
    %28 = vector.broadcast %cst_12 : f32 to vector<8x1xf32>
    %29 = arith.mulf %28, %24 : vector<8x1xf32>
    %30 = arith.subf %27, %29 : vector<8x1xf32>
    %cst_13 = arith.constant 1.000000e+00 : f32
    %31 = vector.broadcast %cst_13 : f32 to vector<8x1xf32>
    %32 = arith.addf %30, %31 : vector<8x1xf32>
    %cst_14 = arith.constant 0.000000e+00 : f32
    %33 = vector.broadcast %cst_14 : f32 to vector<8x1xf32>
    %cst_15 = arith.constant 1.000000e+00 : f32
    %34 = vector.broadcast %cst_15 : f32 to vector<8x1xf32>
    %cst_16 = arith.constant 0.707106769 : f32
    %35 = vector.broadcast %cst_16 : f32 to vector<8x1xf32>
    %36 = arith.cmpf ole, %23, %35 : vector<8x1xf32>
    %37 = arith.extui %36 : vector<8x1xi1> to vector<8x1xi32>
    %38 = arith.sitofp %37 : vector<8x1xi32> to vector<8x1xf32>
    %39 = arith.addf %33, %38 : vector<8x1xf32>
    %cst_17 = arith.constant 0.000000e+00 : f32
    %40 = vector.broadcast %cst_17 : f32 to vector<8x1xf32>
    %41 = arith.subf %40, %34 : vector<8x1xf32>
    %42 = arith.select %36, %41, %34 : vector<8x1xi1>, vector<8x1xf32>
    %cst_18 = arith.constant 1.79489656E-9 : f32
    %43 = vector.broadcast %cst_18 : f32 to vector<8x1xf32>
    %44 = arith.cmpf ole, %23, %43 : vector<8x1xf32>
    %45 = arith.extui %44 : vector<8x1xi1> to vector<8x1xi32>
    %46 = arith.sitofp %45 : vector<8x1xi32> to vector<8x1xf32>
    %47 = arith.addf %39, %46 : vector<8x1xf32>
    %cst_19 = arith.constant 0.000000e+00 : f32
    %48 = vector.broadcast %cst_19 : f32 to vector<8x1xf32>
    %49 = arith.subf %48, %42 : vector<8x1xf32>
    %50 = arith.select %44, %49, %42 : vector<8x1xi1>, vector<8x1xf32>
    %cst_20 = arith.constant -0.707106769 : f32
    %51 = vector.broadcast %cst_20 : f32 to vector<8x1xf32>
    %52 = arith.cmpf ole, %23, %51 : vector<8x1xf32>
    %53 = arith.extui %52 : vector<8x1xi1> to vector<8x1xi32>
    %54 = arith.sitofp %53 : vector<8x1xi32> to vector<8x1xf32>
    %55 = arith.addf %47, %54 : vector<8x1xf32>
    %cst_21 = arith.constant 0.000000e+00 : f32
    %56 = vector.broadcast %cst_21 : f32 to vector<8x1xf32>
    %57 = arith.subf %56, %50 : vector<8x1xf32>
    %58 = arith.select %52, %57, %50 : vector<8x1xi1>, vector<8x1xf32>
    %cst_22 = arith.constant -1.000000e+00 : f32
    %59 = vector.broadcast %cst_22 : f32 to vector<8x1xf32>
    %60 = arith.cmpf ole, %23, %59 : vector<8x1xf32>
    %61 = arith.extui %60 : vector<8x1xi1> to vector<8x1xi32>
    %62 = arith.sitofp %61 : vector<8x1xi32> to vector<8x1xf32>
    %63 = arith.addf %55, %62 : vector<8x1xf32>
    %cst_23 = arith.constant 0.000000e+00 : f32
    %64 = vector.broadcast %cst_23 : f32 to vector<8x1xf32>
    %65 = arith.subf %64, %58 : vector<8x1xf32>
    %66 = arith.select %60, %65, %58 : vector<8x1xi1>, vector<8x1xf32>
    %67 = arith.mulf %66, %32 : vector<8x1xf32>
    %cst_24 = arith.constant 2.000000e+00 : f32
    %68 = vector.broadcast %cst_24 : f32 to vector<8x1xf32>
    %69 = arith.mulf %68, %63 : vector<8x1xf32>
    %70 = arith.subf %67, %69 : vector<8x1xf32>
    %71 = arith.mulf %2, %70 : vector<8x1xf32>
    %72 = arith.subf %71, %20 : vector<8x1xf32>
    %cst_25 = arith.constant 0.00111874705 : f32
    %73 = vector.broadcast %cst_25 : f32 to vector<8x1xf32>
    %74 = arith.mulf %72, %73 : vector<8x1xf32>
    %75 = vector.broadcast %74 : vector<8x1xf32> to vector<8x128xf32>
    %76 = arith.addf %10, %75 : vector<8x128xf32>
    %77 = arith.select %16, %76, %10 : vector<8x128xi1>, vector<8x128xf32>
    %c0_26 = arith.constant 0 : index
    %c0_27 = arith.constant 0 : index
    %78 = vector.load %arg6[%c0_26, %c0_27] : memref<8x128xf32, #tpu.memory_space<vmem>>, vector<8x128xf32>
    tpu.vector_store %arg6[%c0_26, %c0_27], %77 {strides = array<i32>} : memref<8x128xf32, #tpu.memory_space<vmem>>, vector<8x128xf32>,
    return
  }
  func.func @transform_0(%arg0: i32, %arg1: i32) -> (i32, i32) {
    %c0_i32 = arith.constant 0 : i32
    %c0_i32_0 = arith.constant 0 : i32
    return %arg0, %c0_i32 : i32, i32
  }
  func.func @transform_1(%arg0: i32, %arg1: i32) -> (i32, i32) {
    %c0_i32 = arith.constant 0 : i32
    %c0_i32_0 = arith.constant 0 : i32
    return %c0_i32, %arg1 : i32, i32
  }
  func.func @transform_2(%arg0: i32, %arg1: i32) -> (i32, i32) {
    %c0_i32 = arith.constant 0 : i32
    %c0_i32_0 = arith.constant 0 : i32
    return %arg0, %c0_i32 : i32, i32
  }
  func.func @transform_3(%arg0: i32, %arg1: i32) -> (i32, i32) {
    %c0_i32 = arith.constant 0 : i32
    %c0_i32_0 = arith.constant 0 : i32
    return %arg0, %c0_i32 : i32, i32
  }
  func.func @transform_4(%arg0: i32, %arg1: i32) -> (i32, i32) {
    %c0_i32 = arith.constant 0 : i32
    return %arg0, %arg1 : i32, i32
  }
}

</mosaic_0001>

<bundles_post_ra>
// kernel: tpu_custom_call.1
= control target key start
LH: loop header
LB: loop body
LE: loop exit
PB: predicated region body
PF: predicated region fallthrough
CT: control target
= control target key end

     0   :  { %9 = vsyncpa [#allocation3], 0  ;;  %s327_s0 = inlined_call_operand.vmem [shape: f32[8,32], index: 0, kind: input, shape index: {}]   ;;  %s328_s1 = inlined_call_operand.hbm [shape: f32[32,128], index: 1, kind: input, shape index: {}]   ;;  %s329_s2 = inlined_call_operand.vmem [shape: f32[8,1], index: 2, kind: input, shape index: {}]   ;;  %s330_s3 = inlined_call_operand.vmem [shape: s32[8,1], index: 3, kind: input, shape index: {}]   ;;  %s331_s4 = inlined_call_operand.hbm [shape: f32[8,128], index: 4, kind: output, shape index: {}]  }
   0x1   :  { %10 = vsyncpa [#allocation4], 0  ;;  %s275_s15 = smov [#allocation2]  }
   0x2   :  { %s18_s16 = sshll.u32 %s275_s15, 4  ;;  %s19_s16 = int_to_ptr.vmem [resolvable:$true] %s18_s16 }
   0x3   :  { %s239_s17 = scalar_lea.vmem %s19_s16, 512  ;;  %p244_p1 = scmp.lt.s32.totalorder %s19_s16, %s19_s16 }
   0x4   :  { %p240_p0 = scmp.ne.s32.totalorder %s19_s16, %s239_s17  ;;  %p245_p2 = scmp.lt.s32.totalorder %s239_s17, %s239_s17 }
   0x6   :  { %p246_p3 = por %p245_p2, %p244_p1 }
   0x8   :  { %p247_p4 = pnand %p246_p3, %p240_p0 }
   0xa   :  { %250 = shalt.err (!%p247_p4)
}
   0xb   :  { %s276_s18 = smov 128   ;;  %s277_s19 = smov 8  }
   0xc   :  { %24 = dma.hbm_to_vmem [thread:$0]  %s328_s1, 512, %s19_s16, [#allocation3], %s276_s18, %s276_s18, %s277_s19  }
   0xd   :  { %271 = dma.done.wait [#allocation3], 512  }
   0xe   :  { %272 = vsyncadd [#allocation3], 4294966784  ;;  %v278_v0 = vmov 0.0   ;;  %vm279_vm0 = vmmov 0   ;;  %v280_v1 = vmov 0   ;;  %v36_v2 = vld [vmem:[#allocation2 + $0x18] sm:$0xff]  ;;  %v126_v10 = vlaneseq }
   0xf   :  { %208 = vmatprep.subr.mxu0 %v278_v0  ;;  %216 = vmatprep.mubr.msk.f32.mxu0 %vm279_vm0, %v278_v0  ;;  %v35_v3 = vld [vmem:[#allocation2 + $0x10] sm:$0xff]  ;;  %v37_v4 = vld [vmem:[%s329_s2] sm:$0xff]  ;;  %v34_v5 = vld [vmem:[#allocation2 + $0x8] sm:$0xff]  ;;  %vm39_vm1 = vcmask 261120   ;;  %v281_v26 = vmov 1.0  }
  0x10   :  { %227 = vset.pattern.permute.xlu0 %v280_v1  ;;  %228 = vset.pattern.permute.xlu1 %v280_v1  ;;  %v113_v6 = vsub.f32 0.0, %v37_v4  ;;  %v38_v7 = vld [vmem:[%s330_s3] sm:$0xff]  ;;  %v127_v12 = vand.u32 127, %v126_v10  ;;  %v138_v20 = vmax.f32 %v37_v4, 1e-12 }
  0x11   :  { %209 = vmatpush3.msra.mxu0 %v36_v2  ;;  %132 = vperm.xlu1 %228, %v38_v7   ;;  %v33_v8 = vld [vmem:[#allocation2] sm:$0xff] }
  0x12   :  { %210 = vmatprep.subr.mxu0 %v278_v0  ;;  %116 = vperm.xlu0 %227, %v113_v6   ;;  %v32_v9 = vld [vmem:[%s327_s0] sm:$0xff]  ;;  %229 = vrcp.f32 %v138_v20  ;;  %s282_s0 = smov [#allocation5]  }
  0x13   :  { %211 = vmatpush3.msra.mxu0 %v35_v3  ;;  %s189_s2 = sshll.u32 %s282_s0, 4  ;;  %s190_s2 = int_to_ptr.vmem [resolvable:$true] %s189_s2 }
  0x14   :  { %212 = vmatprep.subr.mxu0 %v278_v0  ;;  %s251_s3 = scalar_lea.vmem %s190_s2, 128  ;;  %p256_p6 = scmp.lt.s32.totalorder %s190_s2, %s190_s2 }
  0x15   :  { %213 = vmatpush3.msra.mxu0 %v34_v5  ;;  %p252_p5 = scmp.ne.s32.totalorder %s190_s2, %s251_s3  ;;  %p257_p7 = scmp.lt.s32.totalorder %s251_s3, %s251_s3 }
  0x16   :  { %214 = vmatprep.subr.mxu0 %v278_v0  ;;  %122 = vperm.xlu0 %227, %v37_v4  }
  0x17   :  { %215 = vmatpush3.msra.mxu0 %v33_v8  ;;  %p258_p8 = por %p257_p7, %p256_p6 }
  0x18   :  { %217 = vmatmul.mubr.msk.f32.vlgmr.msra.gmra.mxu0 %vm39_vm1, %v32_v9 }
  0x19   :  { %p259_p9 = pnand %p258_p8, %p252_p5 }
  0x1f   :  { %v230_v21 = vpop.eup %229 }
  0x8c   :  { %v133_v13 = vpop.permute.xlu1 %132 }
  0x8d   :  { %v117_v11 = vpop.permute.xlu0 %116  ;;  %vm134_vm2 = vcmp.eq.s32.totalorder %v127_v12, %v133_v13 }
  0x91   :  { %v123_v16 = vpop.permute.xlu0 %122 }
  0xd8   :  { %v109_v14 = vpop.f32.mrf.mxu0 }
  0xd9   :  { %v119_v15 = vmax.f32 %v109_v14, %v117_v11 }
  0xda   :  { %v218_v17 = vpop.f32.mrf.mxu0 }
  0xdb   :  { %v125_v18 = vmin.f32 %v119_v15, %v123_v16 }
  0xdd   :  { %v135_v19 = vsel %vm134_vm2, %v125_v18, 0.0 }
  0xde   :  { %136 = vadd.xlane.f32.xlu1 %v135_v19 }
 0x167   :  { %v137_v22 = vpop.xlane.xlu1 %136 }
 0x168   :  { %v140_v23 = vmul.f32 %v230_v21, %v137_v22 }
 0x16a   :  { %v141_v24 = vmul.f32 %v140_v23, %v140_v23  ;;  %vm146_vm3 = vcmp.le.f32.partialorder %v140_v23, 0.70710677  ;;  %vm151_vm4 = vcmp.le.f32.partialorder %v140_v23, 1.7948966e-09  ;;  %vm157_vm5 = vcmp.le.f32.partialorder %v140_v23, -0.70710677 }
 0x16b   :  { %v199_v25 = vsel %vm146_vm3, 1.0, %v278_v0  ;;  %v150_v27 = vsel %vm146_vm3, -1.0, %v281_v26  ;;  %v200_v28 = vsel %vm151_vm4, 1.0, %v278_v0  ;;  %v201_v32 = vsel %vm157_vm5, 1.0, %v278_v0 }
 0x16c   :  { %v142_v29 = vmul.f32 8.0, %v141_v24  ;;  %v154_v30 = vadd.f32 %v200_v28, %v199_v25  ;;  %v155_v31 = vsub.f32 0.0, %v150_v27  ;;  %vm163_vm6 = vcmp.le.f32.partialorder %v140_v23, -1.0 }
 0x16d   :  { %v202_v38 = vsel %vm163_vm6, 1.0, %v278_v0 }
 0x16e   :  { %v143_v33 = vmul.f32 %v142_v29, %v141_v24  ;;  %v156_v34 = vsel %vm151_vm4, %v155_v31, %v150_v27  ;;  %v160_v35 = vadd.f32 %v201_v32, %v154_v30 }
 0x16f   :  { %v161_v36 = vsub.f32 0.0, %v156_v34 }
 0x170   :  { %v144_v37 = vsub.f32 %v143_v33, %v142_v29  ;;  %v166_v40 = vadd.f32 %v202_v38, %v160_v35 }
 0x171   :  { %v162_v39 = vsel %vm157_vm5, %v161_v36, %v156_v34 }
 0x172   :  { %v145_v41 = vadd.f32 1.0, %v144_v37  ;;  %v167_v42 = vsub.f32 0.0, %v162_v39  ;;  %v170_v45 = vmul.f32 2.0, %v166_v40 }
 0x174   :  { %v168_v43 = vsel %vm163_vm6, %v167_v42, %v162_v39 }
 0x175   :  { %v169_v44 = vmul.f32 %v168_v43, %v145_v41 }
 0x177   :  { %v171_v46 = vsub.f32 %v169_v44, %v170_v45 }
 0x179   :  { %v172_v47 = vmul.f32 %v171_v46, %v37_v4 }
 0x17b   :  { %v173_v48 = vsub.f32 %v172_v47, %v137_v22 }
 0x17d   :  { %v174_v49 = vmul.f32 0.001118747, %v173_v48 }
 0x17f   :  { %177 = vperm.xlu0 %227, %v174_v49  }
 0x1fa   :  { %v178_v50 = vpop.permute.xlu0 %177 }
 0x1fb   :  { %v180_v51 = vadd.f32 %v178_v50, %v125_v18 }
 0x1fd   :  { %v181_v52 = vsel %vm134_vm2, %v180_v51, %v125_v18 }
 0x1fe   :  { %182 = vst [vmem:[#allocation5] sm:$0xff] %v181_v52 }
 0x1ff   :  { %262 = shalt.err (!%p259_p9)
}
 0x200   :  { %192 = dma.vmem_to_hbm [thread:$0]  %s190_s2, 128, %s331_s4, [#allocation4]  }
 0x201   :  { %273 = dma.done.wait [#allocation4], 128  }
 0x202   :  { %274 = vsyncadd [#allocation4], 4294967168 }
 0x203   :  { %196 = vsyncpa [#allocation3], 1 }
 0x204   :  { %197 = vsyncpa [#allocation4], 1 }

</bundles_post_ra>
